<compile_context>
chip_gen: v5e
topology: v5e:2x2
jax: 0.10.0
libtpu: 0.0.40
codegen_flags: <defaults>
</compile_context>

<pallas_src>
import functools

import jax
import jax.numpy as jnp
from jax import lax
from jax.experimental import pallas as pl
from jax.experimental.pallas import tpu as pltpu


def _attention_kernel(x_ref, wq_ref, wk_ref, wv_ref, wu_ref, bu_ref, o_ref,
                      merged_ref, *, heads, block_t, mm_dtype):
    """One grid step = one (batch, query-tile) pair.

    x_ref  : (1, t, k)   full sequence for this batch element (lane-dense, k last)
    wq/wk/wv : (k, k)    block-diagonal, pre-transposed; k**-0.5 folded into wq
    wu_ref : (k, k)      unify-heads weight, pre-transposed
    bu_ref : (1, k)
    o_ref  : (1, block_t, k)
    merged_ref : VMEM scratch (block_t, k) f32 — head-output slab
    """
    t, k = x_ref.shape[1], x_ref.shape[2]
    dim = k // heads

    x_full = x_ref[0].astype(mm_dtype)                                     # (t, k)
    start = pl.multiple_of(pl.program_id(1) * block_t, block_t)
    x_q = x_ref[0, pl.ds(start, block_t), :].astype(mm_dtype)              # (block_t, k)

    # Single lane-dense matmul per projection; the per-head structure comes from
    # the block-diagonal weights (scale already folded into wq on the host).
    q = jnp.dot(x_q, wq_ref[...], preferred_element_type=jnp.float32)      # (block_t, k)
    kk = jnp.dot(x_full, wk_ref[...], preferred_element_type=jnp.float32)  # (t, k)
    v = jnp.dot(x_full, wv_ref[...], preferred_element_type=jnp.float32)   # (t, k)

    for h in range(heads):  # static unroll; per-head attention is inherent
        lo = h * dim
        qh = q[:, lo:lo + dim].astype(mm_dtype)                            # (block_t, dim)
        kh = kk[:, lo:lo + dim].astype(mm_dtype)                           # (t, dim)
        vh = v[:, lo:lo + dim].astype(mm_dtype)                            # (t, dim)

        # Contract last axes directly: no in-kernel transpose of kh.
        logits = lax.dot_general(qh, kh, (((1,), (1,)), ((), ())),
                                 preferred_element_type=jnp.float32)       # (block_t, t)
        logits = logits - jnp.max(logits, axis=-1, keepdims=True)
        p = jnp.exp(logits)
        denom = jnp.sum(p, axis=-1, keepdims=True)
        # approx=True would route this to the EUP slot; kept exact so the 1e-5
        # numerical check in __main__ holds.
        p = p * pl.reciprocal(denom, approx=False)

        # Write this head's output into its static slice of the scratch slab
        # (no concatenate, bounded live ranges).
        merged_ref[:, lo:lo + dim] = jnp.dot(
            p.astype(mm_dtype), vh, preferred_element_type=jnp.float32)

    y = jnp.dot(merged_ref[...].astype(mm_dtype), wu_ref[...],
                preferred_element_type=jnp.float32) + bu_ref[...]
    o_ref[0] = y.astype(o_ref.dtype)


def self_attention_narrow(x, wq, wk, wv, wu, bu, heads, *,
                          block_t=None, matmul_dtype=None):
    b, t, k = x.shape
    dim = k // heads
    assert heads * dim == k

    if block_t is None:
        block_t = t
    assert t % block_t == 0
    nq = t // block_t

    mm_dtype = matmul_dtype if matmul_dtype is not None else jnp.float32

    # Host-side weight preparation (done once, outside the kernel):
    #   * block-diagonal (k, k) Q/K/V weights, already transposed for x @ W
    #   * k**-0.5 folded into the Q weight (== scaling q and k each by k**-0.25)
    #   * unify weight pre-transposed, bias reshaped to (1, k)
    eye = jnp.eye(heads, dtype=jnp.float32)
    wq_bd = (jnp.kron(eye, wq.T.astype(jnp.float32)) * (float(k) ** -0.5)).astype(mm_dtype)
    wk_bd = jnp.kron(eye, wk.T.astype(jnp.float32)).astype(mm_dtype)
    wv_bd = jnp.kron(eye, wv.T.astype(jnp.float32)).astype(mm_dtype)
    wu_t = wu.T.astype(mm_dtype)
    bu2 = bu.reshape(1, k).astype(jnp.float32)

    kernel = functools.partial(_attention_kernel, heads=heads, block_t=block_t,
                               mm_dtype=mm_dtype)

    # Note: weight index_maps are constant, so their blocks are not re-DMA'd
    # across consecutive grid steps; x is re-fetched only when the batch index
    # changes.
    return pl.pallas_call(
        kernel,
        out_shape=jax.ShapeDtypeStruct((b, t, k), x.dtype),
        grid_spec=pltpu.PrefetchScalarGridSpec(
            num_scalar_prefetch=0,
            grid=(b, nq),
            in_specs=[
                pl.BlockSpec((1, t, k), lambda i, j: (i, 0, 0)),
                pl.BlockSpec((k, k), lambda i, j: (0, 0)),
                pl.BlockSpec((k, k), lambda i, j: (0, 0)),
                pl.BlockSpec((k, k), lambda i, j: (0, 0)),
                pl.BlockSpec((k, k), lambda i, j: (0, 0)),
                pl.BlockSpec((1, k), lambda i, j: (0, 0)),
            ],
            out_specs=pl.BlockSpec((1, block_t, k), lambda i, j: (i, j, 0)),
            scratch_shapes=[pltpu.VMEM((block_t, k), jnp.float32)],
        ),
        compiler_params=pltpu.CompilerParams(
            dimension_semantics=("parallel", "parallel")),
    )(x, wq_bd, wk_bd, wv_bd, wu_t, bu2)


def _reference(x, wq, wk, wv, wu, bu, heads):
    """Pure-JAX reference reproducing the intended PyTorch forward."""
    b, t, k = x.shape
    dim = k // heads
    xh = x.reshape(b, t, heads, dim)
    scale = k ** 0.25
    q = jnp.einsum("bthd,ed->bthe", xh, wq) / scale
    kk = jnp.einsum("bthd,ed->bthe", xh, wk) / scale
    v = jnp.einsum("bthd,ed->bthe", xh, wv)
    logits = jnp.einsum("bthd,bshd->bhts", q, kk)
    p = jax.nn.softmax(logits, axis=-1)
    out = jnp.einsum("bhts,bshd->bthd", p, v).reshape(b, t, k)
    return out @ wu.T + bu


if __name__ == "__main__":
    b, t, k_embed, heads = 2, 8, 32, 8
    dim = k_embed // heads

    key = jax.random.PRNGKey(0)
    kx, k1, k2, k3, k4, k5 = jax.random.split(key, 6)

    x = jax.random.normal(kx, (b, t, k_embed), dtype=jnp.float32)

    # Deterministic PyTorch-default-style init: U(-1/sqrt(fan_in), 1/sqrt(fan_in)).
    bq = 1.0 / (dim ** 0.5)
    wq = jax.random.uniform(k1, (dim, dim), minval=-bq, maxval=bq, dtype=jnp.float32)
    wk = jax.random.uniform(k2, (dim, dim), minval=-bq, maxval=bq, dtype=jnp.float32)
    wv = jax.random.uniform(k3, (dim, dim), minval=-bq, maxval=bq, dtype=jnp.float32)
    bu_bound = 1.0 / (k_embed ** 0.5)
    wu = jax.random.uniform(k4, (k_embed, k_embed), minval=-bu_bound, maxval=bu_bound,
                            dtype=jnp.float32)
    bu = jax.random.uniform(k5, (k_embed,), minval=-bu_bound, maxval=bu_bound,
                            dtype=jnp.float32)

    out = self_attention_narrow(x, wq, wk, wv, wu, bu, heads)
    out = jax.block_until_ready(out)

    ref = _reference(x, wq, wk, wv, wu, bu, heads)
    assert out.shape == (b, t, k_embed)
    assert jnp.allclose(out, ref, atol=1e-5, rtol=1e-5), "kernel/reference mismatch"

    print("KERNEL_OK")
</pallas_src>

<mosaic_0001>
module attributes {stable_mosaic.version = 11 : i64} {
  func.func @_attention_kernel(%arg0: i32, %arg1: i32, %arg2: memref<1x8x32xf32, #tpu.memory_space<vmem>>, %arg3: memref<32x32xf32, #tpu.memory_space<vmem>>, %arg4: memref<32x32xf32, #tpu.memory_space<vmem>>, %arg5: memref<32x32xf32, #tpu.memory_space<vmem>>, %arg6: memref<32x32xf32, #tpu.memory_space<vmem>>, %arg7: memref<1x32xf32, #tpu.memory_space<vmem>>, %arg8: memref<1x8x32xf32, #tpu.memory_space<vmem>>, %arg9: memref<8x32xf32, #tpu.memory_space<vmem>>) attributes {dimension_semantics = [#tpu.dimension_semantics<parallel>, #tpu.dimension_semantics<parallel>], iteration_bounds = array<i64: 2, 1>, scalar_prefetch = 0 : i64, scratch_operands = 1 : i64, tpu.core_type = #tpu.core_type<tc>, window_params = [{transform_indices = @transform_0, window_bounds = array<i64: 1, 8, 32>}, {pipeline_mode = #tpu.pipeline_mode<synchronous>, transform_indices = @transform_1, window_bounds = array<i64: 32, 32>}, {pipeline_mode = #tpu.pipeline_mode<synchronous>, transform_indices = @transform_2, window_bounds = array<i64: 32, 32>}, {pipeline_mode = #tpu.pipeline_mode<synchronous>, transform_indices = @transform_3, window_bounds = array<i64: 32, 32>}, {pipeline_mode = #tpu.pipeline_mode<synchronous>, transform_indices = @transform_4, window_bounds = array<i64: 32, 32>}, {pipeline_mode = #tpu.pipeline_mode<synchronous>, transform_indices = @transform_5, window_bounds = array<i64: 1, 32>}, {transform_indices = @transform_6, window_bounds = array<i64: 1, 8, 32>}]} {
    %c0 = arith.constant 0 : index
    %c0_0 = arith.constant 0 : index
    %c0_1 = arith.constant 0 : index
    %0 = vector.load %arg2[%c0, %c0_0, %c0_1] : memref<1x8x32xf32, #tpu.memory_space<vmem>>, vector<1x8x32xf32>
    %1 = vector.shape_cast %0 : vector<1x8x32xf32> to vector<8x32xf32>
    %c8_i32 = arith.constant 8 : i32
    %2 = arith.muli %arg1, %c8_i32 : i32
    %3 = tpu.assume_multiple %2, 8 : i32
    %c0_2 = arith.constant 0 : index
    %4 = arith.index_cast %3 : i32 to index
    %c0_3 = arith.constant 0 : index
    %5 = vector.load %arg2[%c0_2, %4, %c0_3] : memref<1x8x32xf32, #tpu.memory_space<vmem>>, vector<1x8x32xf32>
    %6 = vector.shape_cast %5 : vector<1x8x32xf32> to vector<8x32xf32>
    %c0_4 = arith.constant 0 : index
    %c0_5 = arith.constant 0 : index
    %7 = vector.load %arg3[%c0_4, %c0_5] : memref<32x32xf32, #tpu.memory_space<vmem>>, vector<32x32xf32>
    %cst = arith.constant dense<0.000000e+00> : vector<8x32xf32>
    %8 = tpu.matmul %6, %7, %cst {dimension_numbers = #tpu.dot_dimension_numbers<[1], [0], [0], [1], [0, 0, 1, 1], [], []>} : vector<8x32xf32>, vector<32x32xf32>, vector<8x32xf32> -> vector<8x32xf32>
    %c0_6 = arith.constant 0 : index
    %c0_7 = arith.constant 0 : index
    %9 = vector.load %arg4[%c0_6, %c0_7] : memref<32x32xf32, #tpu.memory_space<vmem>>, vector<32x32xf32>
    %cst_8 = arith.constant dense<0.000000e+00> : vector<8x32xf32>
    %10 = tpu.matmul %1, %9, %cst_8 {dimension_numbers = #tpu.dot_dimension_numbers<[1], [0], [0], [1], [0, 0, 1, 1], [], []>} : vector<8x32xf32>, vector<32x32xf32>, vector<8x32xf32> -> vector<8x32xf32>
    %c0_9 = arith.constant 0 : index
    %c0_10 = arith.constant 0 : index
    %11 = vector.load %arg5[%c0_9, %c0_10] : memref<32x32xf32, #tpu.memory_space<vmem>>, vector<32x32xf32>
    %cst_11 = arith.constant dense<0.000000e+00> : vector<8x32xf32>
    %12 = tpu.matmul %1, %11, %cst_11 {dimension_numbers = #tpu.dot_dimension_numbers<[1], [0], [0], [1], [0, 0, 1, 1], [], []>} : vector<8x32xf32>, vector<32x32xf32>, vector<8x32xf32> -> vector<8x32xf32>
    %13 = vector.extract_strided_slice %8 {offsets = [0, 0], sizes = [8, 4], strides = [1, 1]} : vector<8x32xf32> to vector<8x4xf32>
    %14 = vector.extract_strided_slice %10 {offsets = [0, 0], sizes = [8, 4], strides = [1, 1]} : vector<8x32xf32> to vector<8x4xf32>
    %15 = vector.extract_strided_slice %12 {offsets = [0, 0], sizes = [8, 4], strides = [1, 1]} : vector<8x32xf32> to vector<8x4xf32>
    %cst_12 = arith.constant dense<0.000000e+00> : vector<8x8xf32>
    %16 = tpu.matmul %13, %14, %cst_12 {dimension_numbers = #tpu.dot_dimension_numbers<[1], [1], [0], [0], [0, 0, 1, 0], [], []>} : vector<8x4xf32>, vector<8x4xf32>, vector<8x8xf32> -> vector<8x8xf32>
    %cst_13 = arith.constant dense<0xFF800000> : vector<8xf32>
    %17 = vector.multi_reduction <maximumf>, %16, %cst_13 [1] : vector<8x8xf32> to vector<8xf32>
    %18 = vector.shape_cast %17 : vector<8xf32> to vector<8x1xf32>
    %19 = vector.broadcast %18 : vector<8x1xf32> to vector<8x8xf32>
    %20 = arith.subf %16, %19 : vector<8x8xf32>
    %21 = math.exp %20 : vector<8x8xf32>
    %cst_14 = arith.constant dense<0.000000e+00> : vector<8xf32>
    %22 = vector.multi_reduction <add>, %21, %cst_14 [1] : vector<8x8xf32> to vector<8xf32>
    %23 = vector.shape_cast %22 : vector<8xf32> to vector<8x1xf32>
    %24 = tpu.reciprocal %23 : vector<8x1xf32> -> vector<8x1xf32>
    %25 = vector.broadcast %24 : vector<8x1xf32> to vector<8x8xf32>
    %26 = arith.mulf %21, %25 : vector<8x8xf32>
    %cst_15 = arith.constant dense<0.000000e+00> : vector<8x4xf32>
    %27 = tpu.matmul %26, %15, %cst_15 {dimension_numbers = #tpu.dot_dimension_numbers<[1], [0], [0], [1], [0, 0, 1, 1], [], []>} : vector<8x8xf32>, vector<8x4xf32>, vector<8x4xf32> -> vector<8x4xf32>
    %c0_16 = arith.constant 0 : index
    %c0_17 = arith.constant 0 : index
    %28 = vector.load %arg9[%c0_16, %c0_17] : memref<8x32xf32, #tpu.memory_space<vmem>>, vector<8x4xf32>
    tpu.vector_store %arg9[%c0_16, %c0_17], %27 {strides = array<i32>} : memref<8x32xf32, #tpu.memory_space<vmem>>, vector<8x4xf32>,
    %29 = vector.extract_strided_slice %8 {offsets = [0, 4], sizes = [8, 4], strides = [1, 1]} : vector<8x32xf32> to vector<8x4xf32>
    %30 = vector.extract_strided_slice %10 {offsets = [0, 4], sizes = [8, 4], strides = [1, 1]} : vector<8x32xf32> to vector<8x4xf32>
    %31 = vector.extract_strided_slice %12 {offsets = [0, 4], sizes = [8, 4], strides = [1, 1]} : vector<8x32xf32> to vector<8x4xf32>
    %cst_18 = arith.constant dense<0.000000e+00> : vector<8x8xf32>
    %32 = tpu.matmul %29, %30, %cst_18 {dimension_numbers = #tpu.dot_dimension_numbers<[1], [1], [0], [0], [0, 0, 1, 0], [], []>} : vector<8x4xf32>, vector<8x4xf32>, vector<8x8xf32> -> vector<8x8xf32>
    %cst_19 = arith.constant dense<0xFF800000> : vector<8xf32>
    %33 = vector.multi_reduction <maximumf>, %32, %cst_19 [1] : vector<8x8xf32> to vector<8xf32>
    %34 = vector.shape_cast %33 : vector<8xf32> to vector<8x1xf32>
    %35 = vector.broadcast %34 : vector<8x1xf32> to vector<8x8xf32>
    %36 = arith.subf %32, %35 : vector<8x8xf32>
    %37 = math.exp %36 : vector<8x8xf32>
    %cst_20 = arith.constant dense<0.000000e+00> : vector<8xf32>
    %38 = vector.multi_reduction <add>, %37, %cst_20 [1] : vector<8x8xf32> to vector<8xf32>
    %39 = vector.shape_cast %38 : vector<8xf32> to vector<8x1xf32>
    %40 = tpu.reciprocal %39 : vector<8x1xf32> -> vector<8x1xf32>
    %41 = vector.broadcast %40 : vector<8x1xf32> to vector<8x8xf32>
    %42 = arith.mulf %37, %41 : vector<8x8xf32>
    %cst_21 = arith.constant dense<0.000000e+00> : vector<8x4xf32>
    %43 = tpu.matmul %42, %31, %cst_21 {dimension_numbers = #tpu.dot_dimension_numbers<[1], [0], [0], [1], [0, 0, 1, 1], [], []>} : vector<8x8xf32>, vector<8x4xf32>, vector<8x4xf32> -> vector<8x4xf32>
    %c0_22 = arith.constant 0 : index
    %c4 = arith.constant 4 : index
    %44 = vector.load %arg9[%c0_22, %c4] : memref<8x32xf32, #tpu.memory_space<vmem>>, vector<8x4xf32>
    tpu.vector_store %arg9[%c0_22, %c4], %43 {strides = array<i32>} : memref<8x32xf32, #tpu.memory_space<vmem>>, vector<8x4xf32>,
    %45 = vector.extract_strided_slice %8 {offsets = [0, 8], sizes = [8, 4], strides = [1, 1]} : vector<8x32xf32> to vector<8x4xf32>
    %46 = vector.extract_strided_slice %10 {offsets = [0, 8], sizes = [8, 4], strides = [1, 1]} : vector<8x32xf32> to vector<8x4xf32>
    %47 = vector.extract_strided_slice %12 {offsets = [0, 8], sizes = [8, 4], strides = [1, 1]} : vector<8x32xf32> to vector<8x4xf32>
    %cst_23 = arith.constant dense<0.000000e+00> : vector<8x8xf32>
    %48 = tpu.matmul %45, %46, %cst_23 {dimension_numbers = #tpu.dot_dimension_numbers<[1], [1], [0], [0], [0, 0, 1, 0], [], []>} : vector<8x4xf32>, vector<8x4xf32>, vector<8x8xf32> -> vector<8x8xf32>
    %cst_24 = arith.constant dense<0xFF800000> : vector<8xf32>
    %49 = vector.multi_reduction <maximumf>, %48, %cst_24 [1] : vector<8x8xf32> to vector<8xf32>
    %50 = vector.shape_cast %49 : vector<8xf32> to vector<8x1xf32>
    %51 = vector.broadcast %50 : vector<8x1xf32> to vector<8x8xf32>
    %52 = arith.subf %48, %51 : vector<8x8xf32>
    %53 = math.exp %52 : vector<8x8xf32>
    %cst_25 = arith.constant dense<0.000000e+00> : vector<8xf32>
    %54 = vector.multi_reduction <add>, %53, %cst_25 [1] : vector<8x8xf32> to vector<8xf32>
    %55 = vector.shape_cast %54 : vector<8xf32> to vector<8x1xf32>
    %56 = tpu.reciprocal %55 : vector<8x1xf32> -> vector<8x1xf32>
    %57 = vector.broadcast %56 : vector<8x1xf32> to vector<8x8xf32>
    %58 = arith.mulf %53, %57 : vector<8x8xf32>
    %cst_26 = arith.constant dense<0.000000e+00> : vector<8x4xf32>
    %59 = tpu.matmul %58, %47, %cst_26 {dimension_numbers = #tpu.dot_dimension_numbers<[1], [0], [0], [1], [0, 0, 1, 1], [], []>} : vector<8x8xf32>, vector<8x4xf32>, vector<8x4xf32> -> vector<8x4xf32>
    %c0_27 = arith.constant 0 : index
    %c8 = arith.constant 8 : index
    %60 = vector.load %arg9[%c0_27, %c8] : memref<8x32xf32, #tpu.memory_space<vmem>>, vector<8x4xf32>
    tpu.vector_store %arg9[%c0_27, %c8], %59 {strides = array<i32>} : memref<8x32xf32, #tpu.memory_space<vmem>>, vector<8x4xf32>,
    %61 = vector.extract_strided_slice %8 {offsets = [0, 12], sizes = [8, 4], strides = [1, 1]} : vector<8x32xf32> to vector<8x4xf32>
    %62 = vector.extract_strided_slice %10 {offsets = [0, 12], sizes = [8, 4], strides = [1, 1]} : vector<8x32xf32> to vector<8x4xf32>
    %63 = vector.extract_strided_slice %12 {offsets = [0, 12], sizes = [8, 4], strides = [1, 1]} : vector<8x32xf32> to vector<8x4xf32>
    %cst_28 = arith.constant dense<0.000000e+00> : vector<8x8xf32>
    %64 = tpu.matmul %61, %62, %cst_28 {dimension_numbers = #tpu.dot_dimension_numbers<[1], [1], [0], [0], [0, 0, 1, 0], [], []>} : vector<8x4xf32>, vector<8x4xf32>, vector<8x8xf32> -> vector<8x8xf32>
    %cst_29 = arith.constant dense<0xFF800000> : vector<8xf32>
    %65 = vector.multi_reduction <maximumf>, %64, %cst_29 [1] : vector<8x8xf32> to vector<8xf32>
    %66 = vector.shape_cast %65 : vector<8xf32> to vector<8x1xf32>
    %67 = vector.broadcast %66 : vector<8x1xf32> to vector<8x8xf32>
    %68 = arith.subf %64, %67 : vector<8x8xf32>
    %69 = math.exp %68 : vector<8x8xf32>
    %cst_30 = arith.constant dense<0.000000e+00> : vector<8xf32>
    %70 = vector.multi_reduction <add>, %69, %cst_30 [1] : vector<8x8xf32> to vector<8xf32>
    %71 = vector.shape_cast %70 : vector<8xf32> to vector<8x1xf32>
    %72 = tpu.reciprocal %71 : vector<8x1xf32> -> vector<8x1xf32>
    %73 = vector.broadcast %72 : vector<8x1xf32> to vector<8x8xf32>
    %74 = arith.mulf %69, %73 : vector<8x8xf32>
    %cst_31 = arith.constant dense<0.000000e+00> : vector<8x4xf32>
    %75 = tpu.matmul %74, %63, %cst_31 {dimension_numbers = #tpu.dot_dimension_numbers<[1], [0], [0], [1], [0, 0, 1, 1], [], []>} : vector<8x8xf32>, vector<8x4xf32>, vector<8x4xf32> -> vector<8x4xf32>
    %c0_32 = arith.constant 0 : index
    %c12 = arith.constant 12 : index
    %76 = vector.load %arg9[%c0_32, %c12] : memref<8x32xf32, #tpu.memory_space<vmem>>, vector<8x4xf32>
    tpu.vector_store %arg9[%c0_32, %c12], %75 {strides = array<i32>} : memref<8x32xf32, #tpu.memory_space<vmem>>, vector<8x4xf32>,
    %77 = vector.extract_strided_slice %8 {offsets = [0, 16], sizes = [8, 4], strides = [1, 1]} : vector<8x32xf32> to vector<8x4xf32>
    %78 = vector.extract_strided_slice %10 {offsets = [0, 16], sizes = [8, 4], strides = [1, 1]} : vector<8x32xf32> to vector<8x4xf32>
    %79 = vector.extract_strided_slice %12 {offsets = [0, 16], sizes = [8, 4], strides = [1, 1]} : vector<8x32xf32> to vector<8x4xf32>
    %cst_33 = arith.constant dense<0.000000e+00> : vector<8x8xf32>
    %80 = tpu.matmul %77, %78, %cst_33 {dimension_numbers = #tpu.dot_dimension_numbers<[1], [1], [0], [0], [0, 0, 1, 0], [], []>} : vector<8x4xf32>, vector<8x4xf32>, vector<8x8xf32> -> vector<8x8xf32>
    %cst_34 = arith.constant dense<0xFF800000> : vector<8xf32>
    %81 = vector.multi_reduction <maximumf>, %80, %cst_34 [1] : vector<8x8xf32> to vector<8xf32>
    %82 = vector.shape_cast %81 : vector<8xf32> to vector<8x1xf32>
    %83 = vector.broadcast %82 : vector<8x1xf32> to vector<8x8xf32>
    %84 = arith.subf %80, %83 : vector<8x8xf32>
    %85 = math.exp %84 : vector<8x8xf32>
    %cst_35 = arith.constant dense<0.000000e+00> : vector<8xf32>
    %86 = vector.multi_reduction <add>, %85, %cst_35 [1] : vector<8x8xf32> to vector<8xf32>
    %87 = vector.shape_cast %86 : vector<8xf32> to vector<8x1xf32>
    %88 = tpu.reciprocal %87 : vector<8x1xf32> -> vector<8x1xf32>
    %89 = vector.broadcast %88 : vector<8x1xf32> to vector<8x8xf32>
    %90 = arith.mulf %85, %89 : vector<8x8xf32>
    %cst_36 = arith.constant dense<0.000000e+00> : vector<8x4xf32>
    %91 = tpu.matmul %90, %79, %cst_36 {dimension_numbers = #tpu.dot_dimension_numbers<[1], [0], [0], [1], [0, 0, 1, 1], [], []>} : vector<8x8xf32>, vector<8x4xf32>, vector<8x4xf32> -> vector<8x4xf32>
    %c0_37 = arith.constant 0 : index
    %c16 = arith.constant 16 : index
    %92 = vector.load %arg9[%c0_37, %c16] : memref<8x32xf32, #tpu.memory_space<vmem>>, vector<8x4xf32>
    tpu.vector_store %arg9[%c0_37, %c16], %91 {strides = array<i32>} : memref<8x32xf32, #tpu.memory_space<vmem>>, vector<8x4xf32>,
    %93 = vector.extract_strided_slice %8 {offsets = [0, 20], sizes = [8, 4], strides = [1, 1]} : vector<8x32xf32> to vector<8x4xf32>
    %94 = vector.extract_strided_slice %10 {offsets = [0, 20], sizes = [8, 4], strides = [1, 1]} : vector<8x32xf32> to vector<8x4xf32>
    %95 = vector.extract_strided_slice %12 {offsets = [0, 20], sizes = [8, 4], strides = [1, 1]} : vector<8x32xf32> to vector<8x4xf32>
    %cst_38 = arith.constant dense<0.000000e+00> : vector<8x8xf32>
    %96 = tpu.matmul %93, %94, %cst_38 {dimension_numbers = #tpu.dot_dimension_numbers<[1], [1], [0], [0], [0, 0, 1, 0], [], []>} : vector<8x4xf32>, vector<8x4xf32>, vector<8x8xf32> -> vector<8x8xf32>
    %cst_39 = arith.constant dense<0xFF800000> : vector<8xf32>
    %97 = vector.multi_reduction <maximumf>, %96, %cst_39 [1] : vector<8x8xf32> to vector<8xf32>
    %98 = vector.shape_cast %97 : vector<8xf32> to vector<8x1xf32>
    %99 = vector.broadcast %98 : vector<8x1xf32> to vector<8x8xf32>
    %100 = arith.subf %96, %99 : vector<8x8xf32>
    %101 = math.exp %100 : vector<8x8xf32>
    %cst_40 = arith.constant dense<0.000000e+00> : vector<8xf32>
    %102 = vector.multi_reduction <add>, %101, %cst_40 [1] : vector<8x8xf32> to vector<8xf32>
    %103 = vector.shape_cast %102 : vector<8xf32> to vector<8x1xf32>
    %104 = tpu.reciprocal %103 : vector<8x1xf32> -> vector<8x1xf32>
    %105 = vector.broadcast %104 : vector<8x1xf32> to vector<8x8xf32>
    %106 = arith.mulf %101, %105 : vector<8x8xf32>
    %cst_41 = arith.constant dense<0.000000e+00> : vector<8x4xf32>
    %107 = tpu.matmul %106, %95, %cst_41 {dimension_numbers = #tpu.dot_dimension_numbers<[1], [0], [0], [1], [0, 0, 1, 1], [], []>} : vector<8x8xf32>, vector<8x4xf32>, vector<8x4xf32> -> vector<8x4xf32>
    %c0_42 = arith.constant 0 : index
    %c20 = arith.constant 20 : index
    %108 = vector.load %arg9[%c0_42, %c20] : memref<8x32xf32, #tpu.memory_space<vmem>>, vector<8x4xf32>
    tpu.vector_store %arg9[%c0_42, %c20], %107 {strides = array<i32>} : memref<8x32xf32, #tpu.memory_space<vmem>>, vector<8x4xf32>,
    %109 = vector.extract_strided_slice %8 {offsets = [0, 24], sizes = [8, 4], strides = [1, 1]} : vector<8x32xf32> to vector<8x4xf32>
    %110 = vector.extract_strided_slice %10 {offsets = [0, 24], sizes = [8, 4], strides = [1, 1]} : vector<8x32xf32> to vector<8x4xf32>
    %111 = vector.extract_strided_slice %12 {offsets = [0, 24], sizes = [8, 4], strides = [1, 1]} : vector<8x32xf32> to vector<8x4xf32>
    %cst_43 = arith.constant dense<0.000000e+00> : vector<8x8xf32>
    %112 = tpu.matmul %109, %110, %cst_43 {dimension_numbers = #tpu.dot_dimension_numbers<[1], [1], [0], [0], [0, 0, 1, 0], [], []>} : vector<8x4xf32>, vector<8x4xf32>, vector<8x8xf32> -> vector<8x8xf32>
    %cst_44 = arith.constant dense<0xFF800000> : vector<8xf32>
    %113 = vector.multi_reduction <maximumf>, %112, %cst_44 [1] : vector<8x8xf32> to vector<8xf32>
    %114 = vector.shape_cast %113 : vector<8xf32> to vector<8x1xf32>
    %115 = vector.broadcast %114 : vector<8x1xf32> to vector<8x8xf32>
    %116 = arith.subf %112, %115 : vector<8x8xf32>
    %117 = math.exp %116 : vector<8x8xf32>
    %cst_45 = arith.constant dense<0.000000e+00> : vector<8xf32>
    %118 = vector.multi_reduction <add>, %117, %cst_45 [1] : vector<8x8xf32> to vector<8xf32>
    %119 = vector.shape_cast %118 : vector<8xf32> to vector<8x1xf32>
    %120 = tpu.reciprocal %119 : vector<8x1xf32> -> vector<8x1xf32>
    %121 = vector.broadcast %120 : vector<8x1xf32> to vector<8x8xf32>
    %122 = arith.mulf %117, %121 : vector<8x8xf32>
    %cst_46 = arith.constant dense<0.000000e+00> : vector<8x4xf32>
    %123 = tpu.matmul %122, %111, %cst_46 {dimension_numbers = #tpu.dot_dimension_numbers<[1], [0], [0], [1], [0, 0, 1, 1], [], []>} : vector<8x8xf32>, vector<8x4xf32>, vector<8x4xf32> -> vector<8x4xf32>
    %c0_47 = arith.constant 0 : index
    %c24 = arith.constant 24 : index
    %124 = vector.load %arg9[%c0_47, %c24] : memref<8x32xf32, #tpu.memory_space<vmem>>, vector<8x4xf32>
    tpu.vector_store %arg9[%c0_47, %c24], %123 {strides = array<i32>} : memref<8x32xf32, #tpu.memory_space<vmem>>, vector<8x4xf32>,
    %125 = vector.extract_strided_slice %8 {offsets = [0, 28], sizes = [8, 4], strides = [1, 1]} : vector<8x32xf32> to vector<8x4xf32>
    %126 = vector.extract_strided_slice %10 {offsets = [0, 28], sizes = [8, 4], strides = [1, 1]} : vector<8x32xf32> to vector<8x4xf32>
    %127 = vector.extract_strided_slice %12 {offsets = [0, 28], sizes = [8, 4], strides = [1, 1]} : vector<8x32xf32> to vector<8x4xf32>
    %cst_48 = arith.constant dense<0.000000e+00> : vector<8x8xf32>
    %128 = tpu.matmul %125, %126, %cst_48 {dimension_numbers = #tpu.dot_dimension_numbers<[1], [1], [0], [0], [0, 0, 1, 0], [], []>} : vector<8x4xf32>, vector<8x4xf32>, vector<8x8xf32> -> vector<8x8xf32>
    %cst_49 = arith.constant dense<0xFF800000> : vector<8xf32>
    %129 = vector.multi_reduction <maximumf>, %128, %cst_49 [1] : vector<8x8xf32> to vector<8xf32>
    %130 = vector.shape_cast %129 : vector<8xf32> to vector<8x1xf32>
    %131 = vector.broadcast %130 : vector<8x1xf32> to vector<8x8xf32>
    %132 = arith.subf %128, %131 : vector<8x8xf32>
    %133 = math.exp %132 : vector<8x8xf32>
    %cst_50 = arith.constant dense<0.000000e+00> : vector<8xf32>
    %134 = vector.multi_reduction <add>, %133, %cst_50 [1] : vector<8x8xf32> to vector<8xf32>
    %135 = vector.shape_cast %134 : vector<8xf32> to vector<8x1xf32>
    %136 = tpu.reciprocal %135 : vector<8x1xf32> -> vector<8x1xf32>
    %137 = vector.broadcast %136 : vector<8x1xf32> to vector<8x8xf32>
    %138 = arith.mulf %133, %137 : vector<8x8xf32>
    %cst_51 = arith.constant dense<0.000000e+00> : vector<8x4xf32>
    %139 = tpu.matmul %138, %127, %cst_51 {dimension_numbers = #tpu.dot_dimension_numbers<[1], [0], [0], [1], [0, 0, 1, 1], [], []>} : vector<8x8xf32>, vector<8x4xf32>, vector<8x4xf32> -> vector<8x4xf32>
    %c0_52 = arith.constant 0 : index
    %c28 = arith.constant 28 : index
    %140 = vector.load %arg9[%c0_52, %c28] : memref<8x32xf32, #tpu.memory_space<vmem>>, vector<8x4xf32>
    tpu.vector_store %arg9[%c0_52, %c28], %139 {strides = array<i32>} : memref<8x32xf32, #tpu.memory_space<vmem>>, vector<8x4xf32>,
    %c0_53 = arith.constant 0 : index
    %c0_54 = arith.constant 0 : index
    %141 = vector.load %arg9[%c0_53, %c0_54] : memref<8x32xf32, #tpu.memory_space<vmem>>, vector<8x32xf32>
    %c0_55 = arith.constant 0 : index
    %c0_56 = arith.constant 0 : index
    %142 = vector.load %arg6[%c0_55, %c0_56] : memref<32x32xf32, #tpu.memory_space<vmem>>, vector<32x32xf32>
    %cst_57 = arith.constant dense<0.000000e+00> : vector<8x32xf32>
    %143 = tpu.matmul %141, %142, %cst_57 {dimension_numbers = #tpu.dot_dimension_numbers<[1], [0], [0], [1], [0, 0, 1, 1], [], []>} : vector<8x32xf32>, vector<32x32xf32>, vector<8x32xf32> -> vector<8x32xf32>
    %c0_58 = arith.constant 0 : index
    %c0_59 = arith.constant 0 : index
    %144 = vector.load %arg7[%c0_58, %c0_59] : memref<1x32xf32, #tpu.memory_space<vmem>>, vector<1x32xf32>
    %145 = vector.broadcast %144 : vector<1x32xf32> to vector<8x32xf32>
    %146 = arith.addf %143, %145 : vector<8x32xf32>
    %c0_60 = arith.constant 0 : index
    %c0_61 = arith.constant 0 : index
    %c0_62 = arith.constant 0 : index
    %147 = vector.load %arg8[%c0_60, %c0_61, %c0_62] : memref<1x8x32xf32, #tpu.memory_space<vmem>>, vector<1x8x32xf32>
    %148 = vector.shape_cast %147 : vector<1x8x32xf32> to vector<8x32xf32>
    %149 = vector.shape_cast %146 : vector<8x32xf32> to vector<1x8x32xf32>
    tpu.vector_store %arg8[%c0_60, %c0_61, %c0_62], %149 {strides = array<i32>} : memref<1x8x32xf32, #tpu.memory_space<vmem>>, vector<1x8x32xf32>,
    return
  }
  func.func @transform_0(%arg0: i32, %arg1: i32) -> (i32, i32, i32) {
    %c0_i32 = arith.constant 0 : i32
    %c0_i32_0 = arith.constant 0 : i32
    %c0_i32_1 = arith.constant 0 : i32
    return %arg0, %c0_i32, %c0_i32_0 : i32, i32, i32
  }
  func.func @transform_1(%arg0: i32, %arg1: i32) -> (i32, i32) {
    %c0_i32 = arith.constant 0 : i32
    %c0_i32_0 = arith.constant 0 : i32
    %c0_i32_1 = arith.constant 0 : i32
    return %c0_i32, %c0_i32_0 : i32, i32
  }
  func.func @transform_2(%arg0: i32, %arg1: i32) -> (i32, i32) {
    %c0_i32 = arith.constant 0 : i32
    %c0_i32_0 = arith.constant 0 : i32
    %c0_i32_1 = arith.constant 0 : i32
    return %c0_i32, %c0_i32_0 : i32, i32
  }
  func.func @transform_3(%arg0: i32, %arg1: i32) -> (i32, i32) {
    %c0_i32 = arith.constant 0 : i32
    %c0_i32_0 = arith.constant 0 : i32
    %c0_i32_1 = arith.constant 0 : i32
    return %c0_i32, %c0_i32_0 : i32, i32
  }
  func.func @transform_4(%arg0: i32, %arg1: i32) -> (i32, i32) {
    %c0_i32 = arith.constant 0 : i32
    %c0_i32_0 = arith.constant 0 : i32
    %c0_i32_1 = arith.constant 0 : i32
    return %c0_i32, %c0_i32_0 : i32, i32
  }
  func.func @transform_5(%arg0: i32, %arg1: i32) -> (i32, i32) {
    %c0_i32 = arith.constant 0 : i32
    %c0_i32_0 = arith.constant 0 : i32
    %c0_i32_1 = arith.constant 0 : i32
    return %c0_i32, %c0_i32_0 : i32, i32
  }
  func.func @transform_6(%arg0: i32, %arg1: i32) -> (i32, i32, i32) {
    %c0_i32 = arith.constant 0 : i32
    %c0_i32_0 = arith.constant 0 : i32
    return %arg0, %arg1, %c0_i32 : i32, i32, i32
  }
}

</mosaic_0001>

<bundles_post_ra>
// kernel: tpu_custom_call.1
= control target key start
LH: loop header
LB: loop body
LE: loop exit
PB: predicated region body
PF: predicated region fallthrough
CT: control target
= control target key end

     0   :  { %11 = vsyncpa [#allocation4], 0  ;;  %s2060_s0 = inlined_call_operand.hbm [shape: f32[2,8,32], index: 0, kind: input, shape index: {}]   ;;  %s2061_s1 = inlined_call_operand.hbm [shape: f32[32,32], index: 1, kind: input, shape index: {}]   ;;  %s2062_s2 = inlined_call_operand.hbm [shape: f32[32,32], index: 2, kind: input, shape index: {}]   ;;  %s2063_s3 = inlined_call_operand.hbm [shape: f32[32,32], index: 3, kind: input, shape index: {}]   ;;  %s2064_s4 = inlined_call_operand.hbm [shape: f32[32,32], index: 4, kind: input, shape index: {}]   ;;  %s2065_s5 = inlined_call_operand.vmem [shape: f32[1,32], index: 5, kind: input, shape index: {}]   ;;  %s2066_s6 = inlined_call_operand.hbm [shape: f32[2,8,32], index: 6, kind: output, shape index: {}]  }
   0x1   :  { %13 = vsyncpa [#allocation4 + $0x1], 0 }
   0x2   :  { %14 = vsyncpa [#allocation7], 0 }
   0x3   :  { %15 = vsyncpa [#allocation10], 0 }
   0x4   :  { %16 = vsyncpa [#allocation5], 0 }
   0x5   :  { %18 = vsyncpa [#allocation5 + $0x1], 0  ;;  %s1764_s21 = smov 0   ;;  %s1766_s22 = smov 0  }
   0x6   :  { %s1768_s23 = smov 0   ;;  %s1770_s24 = smov 0  }
   0x7   :  { %s1772_s25 = smov 0   ;;  %s1774_s26 = smov 0  }
   0x8 LB: > { %s1266_s27 = sadd.s32 4294967295, %s1707_s26   ;;  %p1268_p0 = scmp.ge.s32.totalorder %s1707_s26, 1  ;;  %s1707_s26 = sphi %s1774_s26, %s24_s26   ;;  %s1703_s25 = sphi %s1772_s25, %s2077_s25   ;;  %s1699_s24 = sphi %s1770_s24, %s2076_s24   ;;  %s1695_s23 = sphi %s1768_s23, %s2075_s23   ;;  %s1691_s22 = sphi %s1766_s22, %s2074_s22   ;;  %s1687_s21 = sphi %s1764_s21, %s2073_s21  }
   0x9   : > { %p1798_p1 = scmp.eq.s32.totalorder %s1266_s27, 0  ;;  %p200_p2 = scmp.lt.s32.totalorder %s1707_s26, 3 }
   0xa   : > { %s211_s7 = sshll.u32 %s2061_s1, 4  ;;  %s1709_s9 = smov [#allocation6]   ;;  %s212_s7 = int_to_ptr.hbm [resolvable:$true] %s211_s7 }
   0xb   : > { %p1806_p3 = pnand %p1268_p0, %p200_p2  ;;  %s213_s10 = sshll.u32 %s1709_s9, 4  ;;  %s214_s10 = int_to_ptr.vmem [resolvable:$true] %s213_s10 }
   0xc   : > { %p1273_p6 = scmp.ge.s32.totalorder %s1707_s26, 2  ;;  %s239_s14 = sshll.u32 %s2063_s3, 4  ;;  %s240_s14 = int_to_ptr.hbm [resolvable:$true] %s239_s14 }
   0xd   : > { %p1335_p4 = pneg %p1806_p3  ;;  %s1710_s15 = smov 128  }
   0xe   : > { %s1711_s16 = smov 8   ;;  %s1712_s17 = smov [#allocation9]  }
   0xf   : > { %p1814_p5 = pnand %p1335_p4, %p1798_p1  ;;  %s241_s18 = sshll.u32 %s1712_s17, 4  ;;  %s242_s18 = int_to_ptr.vmem [resolvable:$true] %s241_s18 }
  0x10   : > { %s225_s29 = sshll.u32 %s2062_s2, 4  ;;  %s1714_s13 = smov [#allocation11]   ;;  %s226_s29 = int_to_ptr.hbm [resolvable:$true] %s225_s29 }
  0x11   : > { %1338 = dma.hbm_to_vmem [thread:$0]  (!%p1814_p5), %s212_s7, 512, %s214_s10, [#allocation7], %s1710_s15, %s1710_s15, %s1711_s16  }
  0x12   : > { %1344 = dma.hbm_to_vmem [thread:$0]  (!%p1814_p5), %s240_s14, 512, %s242_s18, [#allocation10], %s1710_s15, %s1710_s15, %s1711_s16  }
  0x13   : > { %s253_s7 = sshll.u32 %s2064_s4, 4  ;;  %s1713_s10 = smov [#allocation8]   ;;  %s254_s7 = int_to_ptr.hbm [resolvable:$true] %s253_s7 }
  0x14   : > { %s227_s12 = sshll.u32 %s1713_s10, 4  ;;  %s255_s17 = sshll.u32 %s1714_s13, 4  ;;  %s228_s12 = int_to_ptr.vmem [resolvable:$true] %s227_s12  ;;  %s256_s17 = int_to_ptr.vmem [resolvable:$true] %s255_s17 }
  0x15   : > { %1341 = dma.hbm_to_vmem [thread:$0]  (!%p1814_p5), %s226_s29, 512, %s228_s12, [#allocation7], %s1710_s15, %s1710_s15, %s1711_s16  }
  0x16   : > { %1347 = dma.hbm_to_vmem [thread:$0]  (!%p1814_p5), %s254_s7, 512, %s256_s17, [#allocation10], %s1710_s15, %s1710_s15, %s1711_s16  }
  0x17   : > { %s36_s14 = sadd.s32 1, %s1703_s25  ;;  %s1267_s18 = sadd.s32 4294967294, %s1707_s26  }
  0x18   : > { %p38_p7 = scmp.ge.s32.totalorder %s36_s14, 2  ;;  %s43_s19 = sadd.s32 1, %s1695_s23 }
  0x19   : > { %p50_p8 = scmp.ne.s32.totalorder %s1695_s23, %s1691_s22  ;;  %p51_p9 = scmp.eq.s32.totalorder %s1707_s26, 0 }
  0x1a   : > { %s2079_s14 = smov (%p38_p7, %s36_s14), 0  ;;  %p56_p10 = scmp.ne.s32.totalorder %s1691_s22, %s1687_s21 }
  0x1b   : > { %s40_s20 = ssub.s32 %s1703_s25, %s2079_s14  ;;  %p187_p11 = scmp.eq.s32.totalorder %s1266_s27, 1 }
  0x1c   : > { %p41_p12 = scmp.eq.s32.totalorder %s40_s20, 0  ;;  %p1852_p13 = por %p1798_p1, %p56_p10 }
  0x1d   : > { %p1856_p0 = por %p187_p11, %p50_p8  ;;  %p193_p2 = scmp.eq.s32.totalorder %s1267_s18, 1 }
  0x1e   : > { %s1861_s16 = scalar_select %p41_p12, %s1695_s23, %s43_s19  }
  0x1f   : > { %p52_p4 = por %p51_p9, %p50_p8  ;;  %p1863_p5 = por %p193_p2, %p56_p10 }
  0x20   : > { %s272_s30 = sand.u32 1, %s1695_s23   ;;  %s1275_s27 = sshll.u32 %s1703_s25, 3 }
  0x21   : > { %p1360_p7 = scmp.lt.s32.totalorder %s1707_s26, 2  ;;  %s1274_s9 = sshll.u32 %s272_s30, 3 }
  0x22   : > { %s280_s12 = scalar_lea.hbm %s2060_s0, %s1275_s27  ;;  %s276_s17 = scalar_lea.vmem [#allocation3], %s1274_s9 }
  0x23   : > { %s282_s13 = sshll.u32 %s280_s12, 4  ;;  %s284_s20 = sshll.u32 %s276_s17, 4  ;;  %s283_s13 = int_to_ptr.hbm [resolvable:$true] %s282_s13  ;;  %s285_s20 = int_to_ptr.vmem [resolvable:$true] %s284_s20 }
  0x24   : > { %p1349_p11 = pnand %p1360_p7, %p52_p4  ;;  %s273_s18 = scalar_lea.sflag [#allocation4], %s272_s30 }
  0x25   : > { %293 = sbr.rel (%p1806_p3) target bundleno = 1116 (0x45c), region = 44  ;;  %s1876_s19 = sand.u32 (!%p1806_p3), 1, %s1691_s22  }
  0x26   : > { %1351 = dma.hbm_to_vmem [thread:$0]  (!%p1349_p11), %s283_s13, 128, %s285_s20, %s273_s18  }
  0x27   : > { %s1277_s7 = sshll.u32 (!%p1806_p3), %s1876_s19, 3  ;;  %s296_s27 = scalar_lea.sflag (!%p1806_p3), [#allocation4], %s1876_s19 }
  0x28   : > { %s299_s9 = scalar_lea.vmem (!%p1806_p3), [#allocation3], %s1277_s7 }
  0x2a   : > { %1670 = dma.done.wait (%p1852_p13), %s296_s27, 128  }
  0x2b   : > { %1672 = vsyncadd (%p1852_p13), %s296_s27, 4294967168 }
  0x2c   : > { %1674 = dma.done.wait (%p1798_p1), [#allocation7], 1024  }
  0x2d   : > { %1676 = vsyncadd (%p1798_p1), [#allocation7], 4294966272 }
  0x2e   : > { %1678 = dma.done.wait (%p1798_p1), [#allocation10], 1024  }
  0x2f   : > { %1680 = vsyncadd (%p1798_p1), [#allocation10], 4294966272  ;;  %v384_v0 = vld [vmem:[#allocation8 + $0x18] sm:$0xff]  ;;  %v383_v1 = vld [vmem:[#allocation8 + $0x10] sm:$0xff]  ;;  %vm357_vm0 = vcmask 261120   ;;  %vm432_vm1 = vcmask 31744  }
  0x30   : > { %v356_v2 = vld [vmem:[#allocation6 + $0x18] sm:$0xff]  ;;  %400 = vmatpush.msra.mxu1 %v384_v0  ;;  %v355_v3 = vld [vmem:[#allocation6 + $0x10] sm:$0xff]  ;;  %v382_v4 = vld [vmem:[#allocation8 + $0x8] sm:$0xff]  ;;  %s1715_s28 = smov 112   ;;  %s1716_s8 = smov 124   ;;  %vm459_vm2 = vcmask 64512  }
  0x31   : > { %373 = vmatpush.msra.mxu0 %v356_v2  ;;  %v354_v5 = vld [vmem:[#allocation6 + $0x8] sm:$0xff]  ;;  %v381_v6 = vld [vmem:[#allocation8] sm:$0xff]  ;;  %v349_v8 = vld [vmem:[%s299_s9] sm:$0xff]  ;;  %s1717_s11 = smov 120   ;;  %s1718_s30 = smov 104  }
  0x32   : > { %401 = vmatpush.msra.mxu1 %v383_v1  ;;  %v353_v7 = vld [vmem:[#allocation6] sm:$0xff]  ;;  %v411_v11 = vld [vmem:[#allocation9 + $0x18] sm:$0xff]  ;;  %v410_v12 = vld [vmem:[#allocation9 + $0x10] sm:$0xff]  ;;  %s1719_s10 = smov 116   ;;  %s1720_s12 = smov 108  }
  0x33   : > { %374 = vmatpush.msra.mxu0 %v355_v3  ;;  %424 = vmatpush.msra.mxu2 %v411_v11  ;;  %v409_v13 = vld [vmem:[#allocation9 + $0x8] sm:$0xff]  ;;  %v408_v14 = vld [vmem:[#allocation9] sm:$0xff]  ;;  %s1721_s13 = smov 100   ;;  %s1722_s17 = smov 4  }
  0x34   : > { %402 = vmatpush.msra.mxu1 %v382_v4  ;;  %s1723_s20 = smov 12   ;;  %s1724_s18 = smov 8  }
  0x35   : > { %375 = vmatpush.msra.mxu0 %v354_v5  ;;  %425 = vmatpush.msra.mxu2 %v410_v12  ;;  %s1725_s27 = smov 20   ;;  %s1726_s9 = smov 16  }
  0x36   : > { %403 = vmatpush.msra.mxu1 %v381_v6 }
  0x37   : > { %376 = vmatpush.msra.mxu0 %v353_v7  ;;  %1284 = vmatmul.msk.f32.vlgmr.msra.gmra.mxu1 %vm357_vm0, %v349_v8 }
  0x38   : > { %1283 = vmatmul.msk.f32.vlgmr.msra.gmra.mxu0 %vm357_vm0, %v349_v8  ;;  %426 = vmatpush.msra.mxu2 %v409_v13 }
  0x3a   : > { %427 = vmatpush.msra.mxu2 %v408_v14 }
  0x3b   : > { %1285 = vmatmul.msk.f32.vlgmr.msra.gmra.mxu2 %vm357_vm0, %v349_v8 }
  0xb4   : > { %v405_v9 = vpop.f32.mrf.mxu1 }
  0xb5   : > { %763 = vrot.lane.b32.xlu2 %v405_v9, %s1715_s28  ;;  %510 = vrot.lane.b32.xlu1 %v405_v9, %s1716_s8  ;;  %v378_v10 = vpop.f32.mrf.mxu0 }
  0xb6   : > { %595 = vrot.lane.b32.xlu0 %v405_v9, %s1717_s11  ;;  %1286 = vmatpush.xpose.msk.msra.mxu3 %vm432_vm1, %v405_v9 }
  0xb9   : > { %1287 = vmatmul.msk.f32.vlgmr.msra.gmra.mxu3 %vm432_vm1, %v378_v10 }
  0xbd   : > { %761 = vrot.lane.b32.xlu2 %v378_v10, %s1715_s28  ;;  %508 = vrot.lane.b32.xlu1 %v378_v10, %s1716_s8 }
  0xbe   : > { %593 = vrot.lane.b32.xlu0 %v378_v10, %s1717_s11  ;;  %v1925_v28 = vpop.f32.mrf.mxu2 }
  0xbf   : > { %502 = vmatpush.msrb.mxu3 %v1925_v28 }
  0xc5   : > { %931 = vrot.lane.b32.xlu2 %v405_v9, %s1718_s30  ;;  %677 = vrot.lane.b32.xlu1 %v378_v10, %s1719_s10 }
  0xc6   : > { %679 = vrot.lane.b32.xlu0 %v405_v9, %s1719_s10 }
  0xcd   : > { %845 = vrot.lane.b32.xlu2 %v378_v10, %s1720_s12  ;;  %847 = vrot.lane.b32.xlu1 %v405_v9, %s1720_s12 }
  0xce   : > { %929 = vrot.lane.b32.xlu0 %v378_v10, %s1718_s30 }
  0xd5   : > { %1013 = vrot.lane.b32.xlu1 %v378_v10, %s1721_s13 }
  0xd6   : > { %1015 = vrot.lane.b32.xlu0 %v405_v9, %s1721_s13 }
  0xdd   : > { %561 = vrot.lane.b32.xlu1 %v1925_v28, %s1716_s8  ;;  %s1728_s8 = smov 28  }
 0x10f   : > { %v764_v15 = vpop.permute.xlu2 %763 }
 0x117   : > { %v762_v16 = vpop.permute.xlu2 %761 }
 0x11f   : > { %v932_v21 = vpop.permute.xlu2 %931 }
 0x127   : > { %v511_v17 = vpop.permute.xlu1 %510  ;;  %v846_v29 = vpop.permute.xlu2 %845 }
 0x128   : > { %v596_v18 = vpop.permute.xlu0 %595  ;;  %1289 = vmatpush.xpose.msk.msrb.mxu0 %vm432_vm1, %v511_v17 }
 0x129   : > { %1292 = vmatpush.xpose.msk.msrb.mxu2 %vm432_vm1, %v596_v18 }
 0x12d   : > { %1298 = vmatpush.xpose.msk.msra.mxu2 %vm432_vm1, %v764_v15 }
 0x12f   : > { %v509_v19 = vpop.permute.xlu1 %508 }
 0x130   : > { %v594_v20 = vpop.permute.xlu0 %593  ;;  %1290 = vmatmul.msk.f32.vlgmr.msrb.gmra.mxu0 %vm432_vm1, %v509_v19 }
 0x131   : > { %1293 = vmatmul.msk.f32.vlgmr.msrb.gmra.mxu2 %vm432_vm1, %v594_v20 }
 0x132   : > { %1304 = vmatpush.xpose.msk.msrb.mxu2 %vm432_vm1, %v932_v21 }
 0x137   : > { %v678_v22 = vpop.permute.xlu1 %677 }
 0x138   : > { %v680_v23 = vpop.permute.xlu0 %679 }
 0x139   : > { %1295 = vmatpush.xpose.msk.msra.mxu0 %vm432_vm1, %v680_v23  ;;  %1299 = vmatmul.msk.f32.vlgmr.msra.gmra.mxu2 %vm432_vm1, %v762_v16 }
 0x13c   : > { %v456_v24 = vpop.f32.mrf.mxu3  ;;  %1296 = vmatmul.msk.f32.vlgmr.msra.gmra.mxu0 %vm432_vm1, %v678_v22 }
 0x13d   : > { %v460_v25 = vsel %vm459_vm2, %v456_v24, -inf }
 0x13e   : > { %461 = vmax.xlane.f32.xlu2 %v460_v25 }
 0x13f   : > { %v848_v26 = vpop.permute.xlu1 %847 }
 0x140   : > { %v930_v27 = vpop.permute.xlu0 %929  ;;  %1301 = vmatpush.xpose.msk.msrb.mxu0 %vm432_vm1, %v848_v26 }
 0x141   : > { %1305 = vmatmul.msk.f32.vlgmr.msrb.gmra.mxu2 %vm432_vm1, %v930_v27 }
 0x144   : > { %1302 = vmatmul.msk.f32.vlgmr.msrb.gmra.mxu0 %vm432_vm1, %v846_v29 }
 0x147   : > { %v1014_v31 = vpop.permute.xlu1 %1013 }
 0x148   : > { %v1016_v30 = vpop.permute.xlu0 %1015 }
 0x149   : > { %1307 = vmatpush.xpose.msk.msra.mxu0 %vm432_vm1, %v1016_v30 }
 0x14c   : > { %1308 = vmatmul.msk.f32.vlgmr.msra.gmra.mxu0 %vm432_vm1, %v1014_v31 }
 0x14f   : > { %v562_v45 = vpop.permute.xlu1 %561 }
 0x150   : > { %582 = vmatpush.msrb.mxu1 %v562_v45 }
 0x1ad   : > { %v533_v32 = vpop.f32.mrf.mxu0 }
 0x1ae   : > { %v536_v33 = vsel %vm459_vm2, %v533_v32, -inf }
 0x1af   : > { %537 = vmax.xlane.f32.xlu0 %v536_v33 }
 0x1b1   : > { %v462_v36 = vpop.xlane.xlu2 %461 }
 0x1b2   : > { %v463_v37 = vsub.f32 %v456_v24, %v462_v36 }
 0x1b4   : > { %v618_v34 = vpop.f32.mrf.mxu2  ;;  %v464_v41 = vmul.f32 1.442695, %v463_v37 }
 0x1b5   : > { %v621_v35 = vsel %vm459_vm2, %v618_v34, -inf }
 0x1b6   : > { %622 = vmax.xlane.f32.xlu1 %v621_v35  ;;  %1435 = vpow2.f32 %v464_v41 }
 0x1b9   : > { %v702_v38 = vpop.f32.mrf.mxu0 }
 0x1ba   : > { %v705_v39 = vsel %vm459_vm2, %v702_v38, -inf }
 0x1bb   : > { %706 = vmax.xlane.f32.xlu2 %v705_v39 }
 0x1bc   : > { %v786_v40 = vpop.f32.mrf.mxu2  ;;  %v1939_v48 = vpop.eup %1435 }
 0x1bd   : > { %v789_v44 = vsel %vm459_vm2, %v786_v40, -inf  ;;  %v466_v51 = vsel %vm459_vm2, %v1939_v48, 0.0 }
 0x1c1   : > { %v870_v42 = vpop.f32.mrf.mxu0 }
 0x1c2   : > { %v873_v43 = vsel %vm459_vm2, %v870_v42, -inf }
 0x1c3   : > { %874 = vmax.xlane.f32.xlu0 %v873_v43  ;;  %790 = vmax.xlane.f32.xlu2 %v789_v44 }
 0x1c4   : > { %v954_v46 = vpop.f32.mrf.mxu2 }
 0x1c5   : > { %v957_v47 = vsel %vm459_vm2, %v954_v46, -inf }
 0x1c6   : > { %958 = vmax.xlane.f32.xlu1 %v957_v47 }
 0x1c9   : > { %v1038_v49 = vpop.f32.mrf.mxu0 }
 0x1ca   : > { %v1041_v50 = vsel %vm459_vm2, %v1038_v49, -inf }
 0x1cb   : > { %1042 = vmax.xlane.f32.xlu2 %v1041_v50  ;;  %467 = vadd.xlane.f32.xlu0 %v466_v51 }
 0x1df   : > { %813 = vrot.lane.b32.xlu1 %v1925_v28, %s1715_s28  ;;  %729 = vrot.lane.b32.xlu0 %v1925_v28, %s1719_s10  ;;  %s1727_s28 = smov 24  }
 0x1e3   : > { %645 = vrot.lane.b32.xlu2 %v1925_v28, %s1717_s11  ;;  %s1312_s11 = sshll.u32 %s1699_s24, 3  ;;  %s1131_s24 = scalar_lea.sflag [#allocation5], %s1876_s19 }
 0x222   : > { %v538_v52 = vpop.xlane.xlu0 %537 }
 0x223   : > { %v539_v53 = vsub.f32 %v533_v32, %v538_v52 }
 0x225   : > { %v540_v54 = vmul.f32 1.442695, %v539_v53 }
 0x227   : > { %1437 = vpow2.f32 %v540_v54 }
 0x229   : > { %v623_v55 = vpop.xlane.xlu1 %622 }
 0x22a   : > { %v624_v56 = vsub.f32 %v618_v34, %v623_v55 }
 0x22c   : > { %v625_v57 = vmul.f32 1.442695, %v624_v56 }
 0x22d   : > { %v1950_v58 = vpop.eup %1437 }
 0x22e   : > { %1439 = vpow2.f32 %v625_v57  ;;  %v707_v59 = vpop.xlane.xlu2 %706  ;;  %v542_v60 = vsel %vm459_vm2, %v1950_v58, 0.0 }
 0x22f   : > { %v708_v61 = vsub.f32 %v702_v38, %v707_v59  ;;  %543 = vadd.xlane.f32.xlu1 %v542_v60 }
 0x231   : > { %v709_v62 = vmul.f32 1.442695, %v708_v61 }
 0x233   : > { %1441 = vpow2.f32 %v709_v62 }
 0x234   : > { %v1954_v63 = vpop.eup %1439 }
 0x235   : > { %v627_v0 = vsel %vm459_vm2, %v1954_v63, 0.0 }
 0x236   : > { %v875_v1 = vpop.xlane.xlu0 %874  ;;  %628 = vadd.xlane.f32.xlu2 %v627_v0  ;;  %v791_v2 = vpop.xlane.xlu2 %790 }
 0x237   : > { %v876_v3 = vsub.f32 %v870_v42, %v875_v1  ;;  %v792_v4 = vsub.f32 %v786_v40, %v791_v2 }
 0x239   : > { %v1958_v5 = vpop.eup %1441  ;;  %v877_v6 = vmul.f32 1.442695, %v876_v3  ;;  %v793_v7 = vmul.f32 1.442695, %v792_v4  ;;  %v959_v8 = vpop.xlane.xlu1 %958 }
 0x23a   : > { %v960_v9 = vsub.f32 %v954_v46, %v959_v8  ;;  %v711_v10 = vsel %vm459_vm2, %v1958_v5, 0.0 }
 0x23b   : > { %1443 = vpow2.f32 %v877_v6  ;;  %712 = vadd.xlane.f32.xlu0 %v711_v10 }
 0x23c   : > { %1445 = vpow2.f32 %v793_v7  ;;  %v961_v11 = vmul.f32 1.442695, %v960_v9 }
 0x23e   : > { %1447 = vpow2.f32 %v961_v11  ;;  %v468_v12 = vpop.xlane.xlu0 %467  ;;  %v1043_v13 = vpop.xlane.xlu2 %1042 }
 0x23f   : > { %1449 = vrcp.f32 %v468_v12  ;;  %v1044_v14 = vsub.f32 %v1038_v49, %v1043_v13  ;;  %v480_v26 = vand.u32 2147483648, %v468_v12  ;;  %v478_v30 = vand.u32 2147483647, %v468_v12 }
 0x240   : > { %vm474_vm4 = vweird.f32 %v468_v12 }
 0x241   : > { %v1962_v15 = vpop.eup %1443  ;;  %v1045_v17 = vmul.f32 1.442695, %v1044_v14  ;;  %v481_v32 = vor.u32 1.1754944e-38, %v480_v26  ;;  %vm479_vm6 = vcmp.eq.f32.partialorder %v478_v30, 8.507059e+37 }
 0x242   : > { %v1964_v16 = vpop.eup %1445  ;;  %v879_v18 = vsel %vm459_vm2, %v1962_v15, 0.0 }
 0x243   : > { %880 = vadd.xlane.f32.xlu2 %v879_v18  ;;  %v795_v19 = vsel %vm459_vm2, %v1964_v16, 0.0  ;;  %1451 = vpow2.f32 %v1045_v17 }
 0x244   : > { %v1970_v20 = vpop.eup %1447  ;;  %796 = vadd.xlane.f32.xlu1 %v795_v19 }
 0x245   : > { %v1450_v21 = vpop.eup %1449  ;;  %v963_v22 = vsel %vm459_vm2, %v1970_v20, 0.0 }
 0x246   : > { %v470_v23 = vmul.f32 %v1450_v21, %v468_v12  ;;  %964 = vadd.xlane.f32.xlu0 %v963_v22  ;;  %v646_v24 = vpop.permute.xlu2 %645  ;;  %vm475_vm3 = vweird.f32 %v1450_v21 }
 0x247   : > { %666 = vmatpush.msra.mxu3 %v646_v24  ;;  %vm476_vm5 = vmor %vm474_vm4, %vm475_vm3 }
 0x248   : > { %v471_v25 = vsub.f32 1.0, %v470_v23 }
 0x249   : > { %v1974_v27 = vpop.eup %1451 }
 0x24a   : > { %v472_v29 = vmul.f32 %v1450_v21, %v471_v25  ;;  %v1047_v33 = vsel %vm459_vm2, %v1974_v27, 0.0 }
 0x24c   : > { %v473_v31 = vadd.f32 %v1450_v21, %v472_v29 }
 0x24e   : > { %1048 = vadd.xlane.f32.xlu0 %v1047_v33  ;;  %v477_v34 = vsel %vm476_vm5, %v1450_v21, %v473_v31 }
 0x24f   : > { %v482_v35 = vsel %vm479_vm6, %v481_v32, %v477_v34 }
 0x250   : > { %v483_v36 = vmul.f32 %v1939_v48, %v482_v35 }
 0x251   : > { %v814_v37 = vpop.permute.xlu1 %813  ;;  %v730_v38 = vpop.permute.xlu0 %729 }
 0x252   : > { %1288 = vmatmul.msk.f32.vlgmr.msrb.gmra.mxu3 %vm459_vm2, %v483_v36  ;;  %750 = vmatpush.msra.mxu1 %v730_v38 }
 0x253   : > { %834 = vmatpush.msrb.mxu3 %v814_v37 }
 0x25b   : > { %897 = vrot.lane.b32.xlu2 %v1925_v28, %s1720_s12  ;;  %s1142_s12 = scalar_lea.hbm %s2066_s6, %s1312_s11 }
 0x25d   : > { %981 = vrot.lane.b32.xlu1 %v1925_v28, %s1718_s30 }
 0x262   : > { %1065 = vrot.lane.b32.xlu0 %v1925_v28, %s1721_s13 }
 0x2a2   : > { %v544_v39 = vpop.xlane.xlu1 %543 }
 0x2a3   : > { %1453 = vrcp.f32 %v544_v39  ;;  %v556_v44 = vand.u32 2147483648, %v544_v39  ;;  %v554_v46 = vand.u32 2147483647, %v544_v39  ;;  %vm550_vm8 = vweird.f32 %v544_v39 }
 0x2a5   : > { %v557_v50 = vor.u32 1.1754944e-38, %v556_v44  ;;  %vm555_vm10 = vcmp.eq.f32.partialorder %v554_v46, 8.507059e+37 }
 0x2a9   : > { %v1454_v40 = vpop.eup %1453  ;;  %v629_v41 = vpop.xlane.xlu2 %628 }
 0x2aa   : > { %v546_v42 = vmul.f32 %v1454_v40, %v544_v39  ;;  %1455 = vrcp.f32 %v629_v41  ;;  %vm551_vm7 = vweird.f32 %v1454_v40  ;;  %v641_v54 = vand.u32 2147483648, %v629_v41 }
 0x2ab   : > { %vm552_vm9 = vmor %vm550_vm8, %vm551_vm7  ;;  %v639_v59 = vand.u32 2147483647, %v629_v41  ;;  %vm635_vm12 = vweird.f32 %v629_v41 }
 0x2ac   : > { %v547_v43 = vsub.f32 1.0, %v546_v42  ;;  %v642_v1 = vor.u32 1.1754944e-38, %v641_v54 }
 0x2ad   : > { %vm640_vm14 = vcmp.eq.f32.partialorder %v639_v59, 8.507059e+37 }
 0x2ae   : > { %v548_v45 = vmul.f32 %v1454_v40, %v547_v43  ;;  %v713_v47 = vpop.xlane.xlu0 %712 }
 0x2af   : > { %1457 = vrcp.f32 %v713_v47  ;;  %v725_v4 = vand.u32 2147483648, %v713_v47  ;;  %vm719_vm3 = vweird.f32 %v713_v47 }
 0x2b0   : > { %v1456_v48 = vpop.eup %1455  ;;  %v549_v49 = vadd.f32 %v1454_v40, %v548_v45 }
 0x2b1   : > { %v631_v51 = vmul.f32 %v1456_v48, %v629_v41  ;;  %vm636_vm11 = vweird.f32 %v1456_v48  ;;  %v726_v12 = vor.u32 1.1754944e-38, %v725_v4 }
 0x2b2   : > { %v553_v28 = vsel %vm552_vm9, %v1454_v40, %v549_v49  ;;  %vm637_vm13 = vmor %vm635_vm12, %vm636_vm11 }
 0x2b3   : > { %v632_v52 = vsub.f32 1.0, %v631_v51  ;;  %v558_v53 = vsel %vm555_vm10, %v557_v50, %v553_v28 }
 0x2b4   : > { %v559_v55 = vmul.f32 %v1950_v58, %v558_v53  ;;  %v723_v58 = vand.u32 2147483647, %v713_v47 }
 0x2b5   : > { %v1458_v56 = vpop.eup %1457  ;;  %v633_v57 = vmul.f32 %v1456_v48, %v632_v52 }
 0x2b6   : > { %v715_v60 = vmul.f32 %v1458_v56, %v713_v47  ;;  %v1987_v61 = vpop.xlane.xlu2 %880  ;;  %1291 = vmatmul.msk.f32.vlgmr.msrb.gmra.mxu1 %vm459_vm2, %v559_v55  ;;  %vm720_vm15 = vweird.f32 %v1458_v56  ;;  %vm724_vm5 = vcmp.eq.f32.partialorder %v723_v58, 8.507059e+37 }
 0x2b7   : > { %v634_v62 = vadd.f32 %v1456_v48, %v633_v57  ;;  %v797_v0 = vpop.xlane.xlu1 %796  ;;  %1459 = vrcp.f32 %v1987_v61  ;;  %vm721_vm4 = vmor %vm719_vm3, %vm720_vm15  ;;  %v891_v24 = vand.u32 2147483647, %v1987_v61  ;;  %v893_v29 = vand.u32 2147483648, %v1987_v61 }
 0x2b8   : > { %v716_v2 = vsub.f32 1.0, %v715_v60  ;;  %1461 = vrcp.f32 %v797_v0  ;;  %v807_v26 = vand.u32 2147483647, %v797_v0  ;;  %v809_v32 = vand.u32 2147483648, %v797_v0 }
 0x2b9   : > { %v638_v3 = vsel %vm637_vm13, %v1456_v48, %v634_v62  ;;  %v1991_v6 = vpop.xlane.xlu0 %964  ;;  %vm887_vm8 = vweird.f32 %v1987_v61  ;;  %vm803_vm9 = vweird.f32 %v797_v0  ;;  %v894_v37 = vor.u32 1.1754944e-38, %v893_v29 }
 0x2ba   : > { %v643_v7 = vsel %vm640_vm14, %v642_v1, %v638_v3  ;;  %v717_v8 = vmul.f32 %v1458_v56, %v716_v2  ;;  %1463 = vrcp.f32 %v1991_v6  ;;  %vm808_vm12 = vcmp.eq.f32.partialorder %v807_v26, 8.507059e+37 }
 0x2bb   : > { %v644_v10 = vmul.f32 %v1954_v63, %v643_v7  ;;  %v810_v39 = vor.u32 1.1754944e-38, %v809_v32  ;;  %vm892_vm13 = vcmp.eq.f32.partialorder %v891_v24, 8.507059e+37  ;;  %v977_v46 = vand.u32 2147483648, %v1991_v6 }
 0x2bc   : > { %v718_v9 = vadd.f32 %v1458_v56, %v717_v8  ;;  %vm971_vm15 = vweird.f32 %v1991_v6  ;;  %v975_v48 = vand.u32 2147483647, %v1991_v6  ;;  %v1101_v8 = vld [vmem:[#allocation11 + $0x18] sm:$0xff] }
 0x2bd   : > { %v1460_v11 = vpop.eup %1459  ;;  %1294 = vmatmul.msk.f32.vlgmr.msra.gmra.mxu3 %vm459_vm2, %v644_v10  ;;  %v978_v52 = vor.u32 1.1754944e-38, %v977_v46  ;;  %1121 = vmatpush.msra.mxu2 %v1101_v8  ;;  %v1099_v10 = vld [vmem:[#allocation11 + $0x8] sm:$0xff] }
 0x2be   : > { %v1462_v13 = vpop.eup %1461  ;;  %v722_v14 = vsel %vm721_vm4, %v1458_v56, %v718_v9  ;;  %v883_v17 = vmul.f32 %v1460_v11, %v1987_v61  ;;  %v898_v18 = vpop.permute.xlu2 %897  ;;  %vm888_vm6 = vweird.f32 %v1460_v11  ;;  %vm976_vm4 = vcmp.eq.f32.partialorder %v975_v48, 8.507059e+37  ;;  %v1100_v9 = vld [vmem:[#allocation11 + $0x10] sm:$0xff] }
 0x2bf   : > { %v727_v19 = vsel %vm724_vm5, %v726_v12, %v722_v14  ;;  %v799_v21 = vmul.f32 %v1462_v13, %v797_v0  ;;  %918 = vmatpush.msrb.mxu1 %v898_v18  ;;  %vm804_vm7 = vweird.f32 %v1462_v13  ;;  %vm889_vm10 = vmor %vm887_vm8, %vm888_vm6  ;;  %1122 = vmatpush.msra.mxu2 %v1100_v9 }
 0x2c0   : > { %v1464_v22 = vpop.eup %1463  ;;  %v884_v23 = vsub.f32 1.0, %v883_v17  ;;  %v728_v63 = vmul.f32 %v1958_v5, %v727_v19  ;;  %vm805_vm11 = vmor %vm803_vm9, %vm804_vm7  ;;  %vm759_vm9 = vcmask 130144  }
 0x2c1   : > { %v800_v25 = vsub.f32 1.0, %v799_v21  ;;  %v967_v30 = vmul.f32 %v1464_v22, %v1991_v6  ;;  %v1049_v31 = vpop.xlane.xlu0 %1048  ;;  %vm972_vm14 = vweird.f32 %v1464_v22  ;;  %1123 = vmatpush.msra.mxu2 %v1099_v10 }
 0x2c2   : > { %v885_v33 = vmul.f32 %v1460_v11, %v884_v23  ;;  %1465 = vrcp.f32 %v1049_v31  ;;  %1297 = vmatmul.msk.f32.vlgmr.msra.gmra.mxu1 %vm459_vm2, %v728_v63  ;;  %vm973_vm3 = vmor %vm971_vm15, %vm972_vm14  ;;  %v1061_v53 = vand.u32 2147483648, %v1049_v31  ;;  %vm1055_vm6 = vweird.f32 %v1049_v31 }
 0x2c3   : > { %v801_v34 = vmul.f32 %v1462_v13, %v800_v25  ;;  %v968_v35 = vsub.f32 1.0, %v967_v30 }
 0x2c4   : > { %v886_v36 = vadd.f32 %v1460_v11, %v885_v33  ;;  %v1062_v59 = vor.u32 1.1754944e-38, %v1061_v53 }
 0x2c5   : > { %v802_v5 = vadd.f32 %v1462_v13, %v801_v34  ;;  %v969_v38 = vmul.f32 %v1464_v22, %v968_v35 }
 0x2c6   : > { %v890_v40 = vsel %vm889_vm10, %v1460_v11, %v886_v36  ;;  %v1098_v11 = vld [vmem:[#allocation11] sm:$0xff]  ;;  %vm843_vm10 = vcmask 162944  }
 0x2c7   : > { %v806_v41 = vsel %vm805_vm11, %v1462_v13, %v802_v5  ;;  %v895_v42 = vsel %vm892_vm13, %v894_v37, %v890_v40  ;;  %v970_v43 = vadd.f32 %v1464_v22, %v969_v38  ;;  %1124 = vmatpush.msra.mxu2 %v1098_v11  ;;  %vm927_vm11 = vcmask 195744  }
 0x2c8   : > { %v1466_v44 = vpop.eup %1465  ;;  %v811_v45 = vsel %vm808_vm12, %v810_v39, %v806_v41  ;;  %v896_v47 = vmul.f32 %v1962_v15, %v895_v42  ;;  %v1059_v15 = vand.u32 2147483647, %v1049_v31  ;;  %vm1011_vm12 = vcmask 228544  }
 0x2c9   : > { %v1051_v49 = vmul.f32 %v1466_v44, %v1049_v31  ;;  %v812_v50 = vmul.f32 %v1964_v16, %v811_v45  ;;  %v974_v51 = vsel %vm973_vm3, %v1464_v22, %v970_v43  ;;  %vm1056_vm5 = vweird.f32 %v1466_v44  ;;  %v1434_v22 = vld [vmem:[%s2065_s5] ss:$0 sm:$0xff] }
 0x2ca   : > { %1303 = vmatmul.msk.f32.vlgmr.msrb.gmra.mxu1 %vm459_vm2, %v896_v47  ;;  %v979_v55 = vsel %vm976_vm4, %v978_v52, %v974_v51  ;;  %vm1057_vm7 = vmor %vm1055_vm6, %vm1056_vm5  ;;  %vm1060_vm8 = vcmp.eq.f32.partialorder %v1059_v15, 8.507059e+37  ;;  %vm1095_vm13 = vcmask 261344  }
 0x2cb   : > { %v1052_v28 = vsub.f32 1.0, %v1051_v49  ;;  %1300 = vmatmul.msk.f32.vlgmr.msrb.gmra.mxu3 %vm459_vm2, %v812_v50  ;;  %v980_v60 = vmul.f32 %v1970_v20, %v979_v55 }
 0x2cd   : > { %v1053_v54 = vmul.f32 %v1466_v44, %v1052_v28 }
 0x2cf   : > { %v1054_v56 = vadd.f32 %v1466_v44, %v1053_v54  ;;  %v982_v57 = vpop.permute.xlu1 %981 }
 0x2d0   : > { %1002 = vmatpush.msra.mxu3 %v982_v57 }
 0x2d1   : > { %v1058_v16 = vsel %vm1057_vm7, %v1466_v44, %v1054_v56 }
 0x2d2   : > { %v1063_v61 = vsel %vm1060_vm8, %v1062_v59, %v1058_v16 }
 0x2d3   : > { %1306 = vmatmul.msk.f32.vlgmr.msra.gmra.mxu3 %vm459_vm2, %v980_v60  ;;  %v1064_v62 = vmul.f32 %v1974_v27, %v1063_v61 }
 0x2d4   : > { %v1066_v0 = vpop.permute.xlu0 %1065 }
 0x2d5   : > { %v504_v1 = vpop.f32.mrf.mxu3  ;;  %1086 = vmatpush.msra.mxu1 %v1066_v0 }
 0x2d6   : > { %507 = vst.msk [vmem:[#allocation2] sm:$0xff] %vm432_vm1, %v504_v1  ;;  %1309 = vmatmul.msk.f32.vlgmr.msra.gmra.mxu1 %vm459_vm2, %v1064_v62  ;;  %vm591_vm1 = vcmask 64544   ;;  %vm675_vm2 = vcmask 97344  }
 0x333   : > { %v584_v2 = vpop.f32.mrf.mxu1 }
 0x334   : > { %588 = vrot.lane.b32.xlu2 %v584_v2, %s1722_s17 }
 0x33f   : > { %v752_v3 = vpop.f32.mrf.mxu1 }
 0x340   : > { %756 = vrot.lane.b32.xlu0 %v752_v3, %s1723_s20  ;;  %v668_v58 = vpop.f32.mrf.mxu3  ;;  %s348_s20 = scalar_lea.vmem [#allocation12], %s1277_s7  ;;  %s1637_s7 = scalar_lea.hbm %s2066_s6, 16 }
 0x341   : > { %672 = vrot.lane.b32.xlu1 %v668_v58, %s1724_s18  ;;  %s1144_s18 = sshll.u32 %s348_s20, 4  ;;  %s1145_s18 = int_to_ptr.vmem [resolvable:$true] %s1144_s18 }
 0x347   : > { %v920_v20 = vpop.f32.mrf.mxu1 }
 0x349   : > { %924 = vrot.lane.b32.xlu1 %v920_v20, %s1725_s27  ;;  %s1146_s27 = sshll.u32 %s1142_s12, 4  ;;  %s1147_s27 = int_to_ptr.hbm [resolvable:$true] %s1146_s27 }
 0x34e   : > { %v836_v27 = vpop.f32.mrf.mxu3 }
 0x34f   : > { %840 = vrot.lane.b32.xlu2 %v836_v27, %s1726_s9  ;;  %s1631_s9 = sshra.s32 %s1147_s27, 4  ;;  %s1632_s9 = int_to_ptr.hbm [resolvable:$true] %s1631_s9 }
 0x350   : > { %p1638_p9 = scmp.lt.s32.totalorder %s1632_s9, %s2066_s6 }
 0x353   : > { %v1088_v4 = vpop.f32.mrf.mxu1 }
 0x356   : > { %v1004_v6 = vpop.f32.mrf.mxu3 }
 0x357   : > { %1008 = vrot.lane.b32.xlu0 %v1004_v6, %s1727_s28  ;;  %1092 = vrot.lane.b32.xlu2 %v1088_v4, %s1728_s8  ;;  %s1633_s28 = scalar_lea.hbm %s1632_s9, 8 }
 0x358   : > { %p1634_p1 = scmp.ne.s32.totalorder %s1632_s9, %s1633_s28  ;;  %p1639_p10 = scmp.lt.s32.totalorder %s1637_s7, %s1633_s28 }
 0x35a   : > { %p1635_p3 = pnand %p1634_p1, %p1856_p0  ;;  %p1640_p12 = por %p1639_p10, %p1638_p9 }
 0x35c   : > { %p1636_p8 = pneg %p1635_p3 }
 0x35e   : > { %p1641_p13 = pnand %p1640_p12, %p1636_p8 }
 0x38e   : > { %v589_v7 = vpop.permute.xlu2 %588 }
 0x38f   : > { %592 = vst.msk [vmem:[#allocation2] sm:$0xff] %vm591_vm1, %v589_v7 }
 0x3a9   : > { %v841_v14 = vpop.permute.xlu2 %840 }
 0x3b1   : > { %v1093_v19 = vpop.permute.xlu2 %1092 }
 0x3b2   : > { %v757_v13 = vpop.permute.xlu0 %756 }
 0x3b3   : > { %v673_v12 = vpop.permute.xlu1 %672 }
 0x3b4   : > { %676 = vst.msk [vmem:[#allocation2] sm:$0xff] %vm675_vm2, %v673_v12 }
 0x3b5   : > { %760 = vst.msk [vmem:[#allocation2] sm:$0xff] %vm759_vm9, %v757_v13 }
 0x3b6   : > { %844 = vst.msk [vmem:[#allocation2] sm:$0xff] %vm843_vm10, %v841_v14 }
 0x3bb   : > { %v925_v17 = vpop.permute.xlu1 %924 }
 0x3bc   : > { %928 = vst.msk [vmem:[#allocation2] sm:$0xff] %vm927_vm11, %v925_v17 }
 0x3c9   : > { %v1009_v18 = vpop.permute.xlu0 %1008 }
 0x3ca   : > { %1012 = vst.msk [vmem:[#allocation2] sm:$0xff] %vm1011_vm12, %v1009_v18 }
 0x3cb   : > { %1096 = vst.msk [vmem:[#allocation2] sm:$0xff] %vm1095_vm13, %v1093_v19 }
 0x3d2   : > { %v1097_v21 = vld [vmem:[#allocation2] sm:$0xff] }
 0x3d3   : > { %1310 = vmatmul.msk.f32.vlgmr.msra.gmra.mxu2 %vm357_vm0, %v1097_v21 }
 0x456   : > { %v1126_v23 = vpop.f32.mrf.mxu2 }
 0x457   : > { %v1127_v24 = vadd.f32 %v1434_v22, %v1126_v23 }
 0x459   : > { %1129 = vst.msk [vmem:[%s348_s20] sm:$0xff] %vm357_vm0, %v1127_v24 }
 0x45a   : > { %1644 = shalt.err (!%p1641_p13)
}
 0x45b   : > { %1333 = dma.vmem_to_hbm [thread:$0]  (%p1856_p0), %s1145_s18, 128, %s1147_s27, %s1131_s24  }
 0x45c PF: > { %s1158_s19 = sand.u32 1, %s1687_s21   ;;  %p1353_p2 = pnand %p1273_p6, %p1863_p5 }
 0x45d   : > { %s1159_s12 = scalar_lea.sflag [#allocation5], %s1158_s19 }
 0x45e   : > { %p1354_p4 = pneg %p1353_p2 }
 0x460   : > { %1682 = dma.done.wait (%p1354_p4), %s1159_s12, 128  }
 0x461   : > { %1684 = vsyncadd (%p1354_p4), %s1159_s12, 4294967168  ;;  %s24_s26 = sadd.s32 1, %s1707_s26   ;;  %s2073_s21 = smov %s1691_s22 }
 0x462   : > { %p21_p7 = scmp.ge.s32.totalorder %s24_s26, 4   ;;  %s2074_s22 = smov %s1695_s23 }
 0x463   : > { %s2075_s23 = smov %s1861_s16  ;;  %s2076_s24 = smov %s1703_s25 }
 0x464   : > { %s2077_s25 = smov %s2079_s14  ;;  %23 = sbr.rel (!%p21_p7) target bundleno = 8 (0x8), region = 106 }
 0x469   :  { %1165 = vsyncpa [#allocation4], 1 }
 0x46a   :  { %1167 = vsyncpa [#allocation4 + $0x1], 1 }
 0x46b   :  { %1168 = vsyncpa [#allocation7], 1 }
 0x46c   :  { %1169 = vsyncpa [#allocation10], 1 }
 0x46d   :  { %1170 = vsyncpa [#allocation5], 1 }
 0x46e   :  { %1172 = vsyncpa [#allocation5 + $0x1], 1 }

</bundles_post_ra>
